<compile_context>
chip_gen: v7x
topology: tpu7x:2x2x1
jax: 0.10.0
libtpu: 0.0.40
codegen_flags: <defaults>
</compile_context>

<pallas_src>
import functools

import jax
import jax.numpy as jnp
from jax.experimental import pallas as pl
from jax.experimental.pallas import tpu as pltpu


def _mlp_kernel(x_ref, w1_ref, b1_ref, w2_ref, b2_ref, o_ref, *, ti):
    """One (row-tile i, intermediate-tile j) step of the tiled MLP.

    x_ref : (tm, D)  bf16     w1_ref: (D, ti)    bf16
    b1_ref: (1, I_pad) f32    w2_ref: (ti, D)    bf16
    b2_ref: (1, D)   f32      o_ref : (tm, D)    f32  (accumulator, resident over j)
    """
    j = pl.program_id(1)

    @pl.when(j == 0)
    def _init():
        o_ref[...] = jnp.zeros_like(o_ref)

    # fc1 slice: (tm, D) @ (D, ti) on the MXU, bf16 inputs, f32 accumulation.
    h = jnp.dot(x_ref[...], w1_ref[...], preferred_element_type=jnp.float32)

    # Bias slice from the resident (1, I_pad) b1 block; sublane-broadcast add.
    off = pl.multiple_of(j * ti, 128)
    h = h + b1_ref[:, pl.ds(off, ti)]

    # gelu(approximate='tanh') in f32 on the VPU/EUP; cube via mul, not pow.
    c = jnp.float32(0.7978845608028654)  # sqrt(2/pi)
    h = 0.5 * h * (1.0 + jnp.tanh(c * (h + 0.044715 * (h * h * h))))
    # TODO(synk): on v6e/v7x the gelu chain could run in bf16 for ~2x VPU
    # throughput; kept f32 here for accuracy / v5e compatibility.

    # fc2 partial: accumulate this intermediate slice directly into the
    # resident f32 output tile (no separate scratch accumulator needed).
    o_ref[...] += jnp.dot(h.astype(jnp.bfloat16), w2_ref[...],
                          preferred_element_type=jnp.float32)

    @pl.when(j == pl.num_programs(1) - 1)
    def _finalize():
        o_ref[...] += b2_ref[...]


def _round_up(x, m):
    return ((x + m - 1) // m) * m


def siglip_mlp(x, w1, b1, w2, b2, *, tm=None, ti=None,
               vmem_limit_bytes=48 << 20):
    """x: (B, S, D). w1: (D, I), w2: (I, D) pre-transposed. b1: (I,), b2: (D,)."""
    B, S, D = x.shape
    I = w1.shape[1]
    M = B * S

    # Tile sizes: rows in multiples of 8 (sublanes), intermediate in multiples
    # of 128 (lanes).  tm=512 keeps the per-row-tile weight stream compute
    # bound on v5e/v6e/v7x while leaving >=2 row tiles for v7x's two
    # TensorCores at realistic M; ti=512 bounds the (tm, ti) intermediate.
    if tm is None:
        tm = min(512, _round_up(M, 8))
    if ti is None:
        ti = min(512, _round_up(I, 128))

    M_pad = _round_up(M, tm)
    I_pad = _round_up(I, ti)

    # Zero padding is exact: padded intermediate lanes have zero weights and
    # zero bias -> gelu(0) = 0 -> contribute 0 through fc2's zero rows.
    # Padded rows are sliced off below.
    x2d = x.reshape(M, D).astype(jnp.bfloat16)
    if M_pad != M:
        x2d = jnp.pad(x2d, ((0, M_pad - M), (0, 0)))

    w1_bf = w1.astype(jnp.bfloat16)
    w2_bf = w2.astype(jnp.bfloat16)
    b1_2d = b1.reshape(1, I).astype(jnp.float32)
    if I_pad != I:
        w1_bf = jnp.pad(w1_bf, ((0, 0), (0, I_pad - I)))
        w2_bf = jnp.pad(w2_bf, ((0, I_pad - I), (0, 0)))
        b1_2d = jnp.pad(b1_2d, ((0, 0), (0, I_pad - I)))
    b2_2d = b2.reshape(1, D).astype(jnp.float32)

    grid = (M_pad // tm, I_pad // ti)

    out2d = pl.pallas_call(
        functools.partial(_mlp_kernel, ti=ti),
        out_shape=jax.ShapeDtypeStruct((M_pad, D), jnp.float32),
        grid_spec=pltpu.PrefetchScalarGridSpec(
            num_scalar_prefetch=0,
            grid=grid,
            in_specs=[
                pl.BlockSpec((tm, D), lambda i, j: (i, 0)),      # x row tile (bf16)
                pl.BlockSpec((D, ti), lambda i, j: (0, j)),      # w1 column slice
                pl.BlockSpec((1, I_pad), lambda i, j: (0, 0)),   # b1 (resident)
                pl.BlockSpec((ti, D), lambda i, j: (j, 0)),      # w2 row slice
                pl.BlockSpec((1, D), lambda i, j: (0, 0)),       # b2 (resident)
            ],
            out_specs=pl.BlockSpec((tm, D), lambda i, j: (i, 0)),
        ),
        compiler_params=pltpu.CompilerParams(
            # Row tiles independent (megacore / 2-TC sharding on v7x);
            # intermediate reduction axis is last and "arbitrary".
            dimension_semantics=("parallel", "arbitrary"),
            vmem_limit_bytes=vmem_limit_bytes,
        ),
    )(x2d, w1_bf, b1_2d, w2_bf, b2_2d)

    return out2d[:M].reshape(B, S, D)


def _reference(x, w1, b1, w2, b2):
    """Pure-JAX f32 reference mirroring the PyTorch forward."""
    h = x @ w1 + b1
    h = jax.nn.gelu(h, approximate=True)   # tanh approximation, as in torch
    return h @ w2 + b2


def _run_case(key, B, S, D, I):
    k_x, k_w1, k_b1, k_w2, k_b2 = jax.random.split(key, 5)
    w1 = (0.05 * jax.random.normal(k_w1, (D, I))).astype(jnp.float32)
    b1 = (0.05 * jax.random.normal(k_b1, (I,))).astype(jnp.float32)
    w2 = (0.05 * jax.random.normal(k_w2, (I, D))).astype(jnp.float32)
    b2 = (0.05 * jax.random.normal(k_b2, (D,))).astype(jnp.float32)
    x = jax.random.normal(k_x, (B, S, D), dtype=jnp.float32)

    out = jax.block_until_ready(siglip_mlp(x, w1, b1, w2, b2))
    ref = _reference(x, w1, b1, w2, b2)
    assert out.shape == (B, S, D)
    # bf16 matmul inputs with f32 accumulation -> bf16-aware tolerance.
    assert jnp.allclose(out, ref, rtol=2e-2, atol=2e-2), "mismatch vs JAX reference"


if __name__ == "__main__":
    key = jax.random.PRNGKey(0)
    k1, k2 = jax.random.split(key)

    # Aligned small config (exercises the plain tiled path).
    _run_case(k1, B=2, S=8, D=128, I=256)
    # Ragged small config (M=14 not a multiple of 8, I=200 not a multiple of
    # 128) -> exercises the zero-padding path used for real SigLIP shapes.
    _run_case(k2, B=2, S=7, D=128, I=200)

    print("KERNEL_OK")
</pallas_src>

<mosaic_0001>
module attributes {stable_mosaic.version = 11 : i64} {
  func.func @_mlp_kernel(%arg0: i32, %arg1: i32, %arg2: memref<16x128xbf16, #tpu.memory_space<vmem>>, %arg3: memref<128x256xbf16, #tpu.memory_space<vmem>>, %arg4: memref<1x256xf32, #tpu.memory_space<vmem>>, %arg5: memref<256x128xbf16, #tpu.memory_space<vmem>>, %arg6: memref<1x128xf32, #tpu.memory_space<vmem>>, %arg7: memref<16x128xf32, #tpu.memory_space<vmem>>) attributes {dimension_semantics = [#tpu.dimension_semantics<parallel>, #tpu.dimension_semantics<arbitrary>], iteration_bounds = array<i64: 1, 1>, scalar_prefetch = 0 : i64, scratch_operands = 0 : i64, tpu.core_type = #tpu.core_type<tc>, window_params = [{transform_indices = @transform_0, window_bounds = array<i64: 16, 128>}, {transform_indices = @transform_1, window_bounds = array<i64: 128, 256>}, {pipeline_mode = #tpu.pipeline_mode<synchronous>, transform_indices = @transform_2, window_bounds = array<i64: 1, 256>}, {transform_indices = @transform_3, window_bounds = array<i64: 256, 128>}, {pipeline_mode = #tpu.pipeline_mode<synchronous>, transform_indices = @transform_4, window_bounds = array<i64: 1, 128>}, {transform_indices = @transform_5, window_bounds = array<i64: 16, 128>}]} {
    %c0_i32 = arith.constant 0 : i32
    %0 = arith.cmpi eq, %arg1, %c0_i32 : i32
    %1 = arith.extui %0 : i1 to i32
    %c0_i32_0 = arith.constant 0 : i32
    %2 = arith.cmpi ne, %1, %c0_i32_0 : i32
    scf.if %2 {
      %cst_18 = arith.constant 0.000000e+00 : f32
      %34 = vector.broadcast %cst_18 : f32 to vector<16x128xf32>
      %c0_19 = arith.constant 0 : index
      %c0_20 = arith.constant 0 : index
      %35 = vector.load %arg7[%c0_19, %c0_20] : memref<16x128xf32, #tpu.memory_space<vmem>>, vector<16x128xf32>
      tpu.vector_store %arg7[%c0_19, %c0_20], %34 {strides = array<i32>} : memref<16x128xf32, #tpu.memory_space<vmem>>, vector<16x128xf32>,
    } else {
    }
    %c0 = arith.constant 0 : index
    %c0_1 = arith.constant 0 : index
    %3 = vector.load %arg2[%c0, %c0_1] : memref<16x128xbf16, #tpu.memory_space<vmem>>, vector<16x128xbf16>
    %c0_2 = arith.constant 0 : index
    %c0_3 = arith.constant 0 : index
    %4 = vector.load %arg3[%c0_2, %c0_3] : memref<128x256xbf16, #tpu.memory_space<vmem>>, vector<128x256xbf16>
    %cst = arith.constant dense<0.000000e+00> : vector<16x256xf32>
    %5 = tpu.matmul %3, %4, %cst {dimension_numbers = #tpu.dot_dimension_numbers<[1], [0], [0], [1], [0, 0, 1, 1], [], []>} : vector<16x128xbf16>, vector<128x256xbf16>, vector<16x256xf32> -> vector<16x256xf32>
    %c256_i32 = arith.constant 256 : i32
    %6 = arith.muli %arg1, %c256_i32 : i32
    %7 = tpu.assume_multiple %6, 128 : i32
    %c0_4 = arith.constant 0 : index
    %8 = arith.index_cast %7 : i32 to index
    %9 = vector.load %arg4[%c0_4, %8] : memref<1x256xf32, #tpu.memory_space<vmem>>, vector<1x256xf32>
    %10 = vector.broadcast %9 : vector<1x256xf32> to vector<16x256xf32>
    %11 = arith.addf %5, %10 : vector<16x256xf32>
    %cst_5 = arith.constant 5.000000e-01 : f32
    %12 = vector.broadcast %cst_5 : f32 to vector<16x256xf32>
    %13 = arith.mulf %12, %11 : vector<16x256xf32>
    %14 = arith.mulf %11, %11 : vector<16x256xf32>
    %15 = arith.mulf %14, %11 : vector<16x256xf32>
    %cst_6 = arith.constant 4.471500e-02 : f32
    %16 = vector.broadcast %cst_6 : f32 to vector<16x256xf32>
    %17 = arith.mulf %16, %15 : vector<16x256xf32>
    %18 = arith.addf %11, %17 : vector<16x256xf32>
    %cst_7 = arith.constant 0.797884583 : f32
    %19 = vector.broadcast %cst_7 : f32 to vector<16x256xf32>
    %20 = arith.mulf %19, %18 : vector<16x256xf32>
    %21 = math.tanh %20 : vector<16x256xf32>
    %cst_8 = arith.constant 1.000000e+00 : f32
    %22 = vector.broadcast %cst_8 : f32 to vector<16x256xf32>
    %23 = arith.addf %22, %21 : vector<16x256xf32>
    %24 = arith.mulf %13, %23 : vector<16x256xf32>
    %c0_9 = arith.constant 0 : index
    %c0_10 = arith.constant 0 : index
    %25 = vector.load %arg7[%c0_9, %c0_10] : memref<16x128xf32, #tpu.memory_space<vmem>>, vector<16x128xf32>
    %26 = arith.truncf %24 : vector<16x256xf32> to vector<16x256xbf16>
    %c0_11 = arith.constant 0 : index
    %c0_12 = arith.constant 0 : index
    %27 = vector.load %arg5[%c0_11, %c0_12] : memref<256x128xbf16, #tpu.memory_space<vmem>>, vector<256x128xbf16>
    %cst_13 = arith.constant dense<0.000000e+00> : vector<16x128xf32>
    %28 = tpu.matmul %26, %27, %cst_13 {dimension_numbers = #tpu.dot_dimension_numbers<[1], [0], [0], [1], [0, 0, 1, 1], [], []>} : vector<16x256xbf16>, vector<256x128xbf16>, vector<16x128xf32> -> vector<16x128xf32>
    %29 = arith.addf %25, %28 : vector<16x128xf32>
    %c0_14 = arith.constant 0 : index
    %c0_15 = arith.constant 0 : index
    %30 = vector.load %arg7[%c0_14, %c0_15] : memref<16x128xf32, #tpu.memory_space<vmem>>, vector<16x128xf32>
    tpu.vector_store %arg7[%c0_14, %c0_15], %29 {strides = array<i32>} : memref<16x128xf32, #tpu.memory_space<vmem>>, vector<16x128xf32>,
    %c0_i32_16 = arith.constant 0 : i32
    %31 = arith.cmpi eq, %arg1, %c0_i32_16 : i32
    %32 = arith.extui %31 : i1 to i32
    %c0_i32_17 = arith.constant 0 : i32
    %33 = arith.cmpi ne, %32, %c0_i32_17 : i32
    scf.if %33 {
      %c0_18 = arith.constant 0 : index
      %c0_19 = arith.constant 0 : index
      %34 = vector.load %arg7[%c0_18, %c0_19] : memref<16x128xf32, #tpu.memory_space<vmem>>, vector<16x128xf32>
      %c0_20 = arith.constant 0 : index
      %c0_21 = arith.constant 0 : index
      %35 = vector.load %arg6[%c0_20, %c0_21] : memref<1x128xf32, #tpu.memory_space<vmem>>, vector<1x128xf32>
      %36 = vector.broadcast %35 : vector<1x128xf32> to vector<16x128xf32>
      %37 = arith.addf %34, %36 : vector<16x128xf32>
      %c0_22 = arith.constant 0 : index
      %c0_23 = arith.constant 0 : index
      %38 = vector.load %arg7[%c0_22, %c0_23] : memref<16x128xf32, #tpu.memory_space<vmem>>, vector<16x128xf32>
      tpu.vector_store %arg7[%c0_22, %c0_23], %37 {strides = array<i32>} : memref<16x128xf32, #tpu.memory_space<vmem>>, vector<16x128xf32>,
    } else {
    }
    return
  }
  func.func @transform_0(%arg0: i32, %arg1: i32) -> (i32, i32) {
    %c0_i32 = arith.constant 0 : i32
    %c0_i32_0 = arith.constant 0 : i32
    return %arg0, %c0_i32 : i32, i32
  }
  func.func @transform_1(%arg0: i32, %arg1: i32) -> (i32, i32) {
    %c0_i32 = arith.constant 0 : i32
    %c0_i32_0 = arith.constant 0 : i32
    return %c0_i32, %arg1 : i32, i32
  }
  func.func @transform_2(%arg0: i32, %arg1: i32) -> (i32, i32) {
    %c0_i32 = arith.constant 0 : i32
    %c0_i32_0 = arith.constant 0 : i32
    %c0_i32_1 = arith.constant 0 : i32
    return %c0_i32, %c0_i32_0 : i32, i32
  }
  func.func @transform_3(%arg0: i32, %arg1: i32) -> (i32, i32) {
    %c0_i32 = arith.constant 0 : i32
    %c0_i32_0 = arith.constant 0 : i32
    return %arg1, %c0_i32 : i32, i32
  }
  func.func @transform_4(%arg0: i32, %arg1: i32) -> (i32, i32) {
    %c0_i32 = arith.constant 0 : i32
    %c0_i32_0 = arith.constant 0 : i32
    %c0_i32_1 = arith.constant 0 : i32
    return %c0_i32, %c0_i32_0 : i32, i32
  }
  func.func @transform_5(%arg0: i32, %arg1: i32) -> (i32, i32) {
    %c0_i32 = arith.constant 0 : i32
    %c0_i32_0 = arith.constant 0 : i32
    return %arg0, %c0_i32 : i32, i32
  }
}

</mosaic_0001>

<bundles_post_ra>
// kernel: tpu_custom_call.1
= control target key start
LH: loop header
LB: loop body
LE: loop exit
PB: predicated region body
PF: predicated region fallthrough
CT: control target
= control target key end

     0   :  { %10 = vsyncpa [#allocation3], 0  ;;  %s788_s0 = inlined_call_operand.hbm [shape: bf16[16,128], index: 0, kind: input, shape index: {}]   ;;  %s789_s1 = inlined_call_operand.hbm [shape: bf16[128,256], index: 1, kind: input, shape index: {}]   ;;  %s790_s2 = inlined_call_operand.vmem [shape: f32[1,256], index: 2, kind: input, shape index: {}]   ;;  %s791_s3 = inlined_call_operand.hbm [shape: bf16[256,128], index: 3, kind: input, shape index: {}]   ;;  %s792_s4 = inlined_call_operand.vmem [shape: f32[1,128], index: 4, kind: input, shape index: {}]   ;;  %s793_s5 = inlined_call_operand.hbm [shape: f32[16,128], index: 5, kind: output, shape index: {}]  }
   0x1   :  { %11 = vsyncpa [#allocation6], 0 }
   0x2   :  { %12 = vsyncpa [#allocation4], 0  ;;  %s689_s18 = smov [#allocation5]   ;;  %s595_s22 = scalar_lea.hbm %s789_s1, 2048 }
   0x3   :  { %s30_s19 = sshll.u32 %s689_s18, 4  ;;  %p596_p0 = scmp.ne.s32.totalorder %s789_s1, %s595_s22  ;;  %s31_s19 = int_to_ptr.vmem [resolvable:$true] %s30_s19 }
   0x4   :  { %p599_p1 = scmp.lt.u32.totalorder %s595_s22, %s789_s1 }
   0x6   :  { %p601_p2 = pnand %p599_p1, %p596_p0 }
   0x8   :  { %604 = shalt.err (!%p601_p2)
}
   0x9   :  { %s605_s27 = scalar_lea.vmem %s31_s19, 2048  ;;  %p610_p4 = scmp.lt.s32.totalorder %s31_s19, %s31_s19 }
   0xa   :  { %p606_p3 = scmp.ne.s32.totalorder %s31_s19, %s605_s27  ;;  %p611_p5 = scmp.lt.s32.totalorder %s605_s27, %s605_s27 }
   0xc   :  { %p612_p6 = por %p611_p5, %p610_p4 }
   0xe   :  { %p613_p7 = pnand %p612_p6, %p606_p3 }
  0x10   :  { %616 = shalt.err (!%p613_p7)
}
  0x11   :  { %s690_s28 = smov 128   ;;  %s691_s29 = smov 8  }
  0x12   :  { %36 = dma.hbm_to_vmem [thread:$0]  %s789_s1, 2048, %s31_s19, [#allocation6], %s690_s28, %s690_s28, %s691_s29  }
  0x13   :  { %s692_s7 = smov [#allocation2]   ;;  %s617_s11 = scalar_lea.hbm %s788_s0, 128 }
  0x14   :  { %s18_s8 = sshll.u32 %s692_s7, 4  ;;  %p618_p8 = scmp.ne.s32.totalorder %s788_s0, %s617_s11  ;;  %s19_s8 = int_to_ptr.vmem [resolvable:$true] %s18_s8 }
  0x15   :  { %p621_p9 = scmp.lt.u32.totalorder %s617_s11, %s788_s0 }
  0x17   :  { %p623_p10 = pnand %p621_p9, %p618_p8 }
  0x19   :  { %626 = shalt.err (!%p623_p10)
}
  0x1a   :  { %s627_s16 = scalar_lea.vmem %s19_s8, 128  ;;  %p632_p12 = scmp.lt.s32.totalorder %s19_s8, %s19_s8 }
  0x1b   :  { %p628_p11 = scmp.ne.s32.totalorder %s19_s8, %s627_s16  ;;  %p633_p13 = scmp.lt.s32.totalorder %s627_s16, %s627_s16 }
  0x1d   :  { %p634_p0 = por %p633_p13, %p632_p12 }
  0x1f   :  { %p635_p1 = pnand %p634_p0, %p628_p11 }
  0x21   :  { %638 = shalt.err (!%p635_p1)
}
  0x22   :  { %s693_s1 = smov 64   ;;  %s694_s17 = smov 4  }
  0x23   :  { %24 = dma.hbm_to_vmem [thread:$0]  %s788_s0, 128, %s19_s8, [#allocation3], %s693_s1, %s693_s1, %s694_s17  }
  0x24   :  { %s695_s20 = smov [#allocation7]   ;;  %s639_s24 = scalar_lea.hbm %s791_s3, 2048 }
  0x25   :  { %s44_s21 = sshll.u32 %s695_s20, 4  ;;  %p640_p2 = scmp.ne.s32.totalorder %s791_s3, %s639_s24  ;;  %s45_s21 = int_to_ptr.vmem [resolvable:$true] %s44_s21 }
  0x26   :  { %p643_p3 = scmp.lt.u32.totalorder %s639_s24, %s791_s3 }
  0x28   :  { %p645_p4 = pnand %p643_p3, %p640_p2 }
  0x2a   :  { %648 = shalt.err (!%p645_p4)
}
  0x2b   :  { %s649_s6 = scalar_lea.vmem %s45_s21, 2048  ;;  %p654_p6 = scmp.lt.s32.totalorder %s45_s21, %s45_s21 }
  0x2c   :  { %p650_p5 = scmp.ne.s32.totalorder %s45_s21, %s649_s6  ;;  %p655_p7 = scmp.lt.s32.totalorder %s649_s6, %s649_s6 }
  0x2e   :  { %p656_p8 = por %p655_p7, %p654_p6 }
  0x30   :  { %p657_p9 = pnand %p656_p8, %p650_p5 }
  0x32   :  { %660 = shalt.err (!%p657_p9)
}
  0x33   :  { %50 = dma.hbm_to_vmem [thread:$0]  %s791_s3, 2048, %s45_s21, [#allocation6], %s693_s1, %s693_s1, %s694_s17  }
  0x34   :  { %683 = dma.done.wait [#allocation3], 128  }
  0x35   :  { %684 = vsyncadd [#allocation3], 4294967168 }
  0x36   :  { %685 = dma.done.wait [#allocation6], 4096  }
  0x37   :  { %686 = vsyncadd [#allocation6], 4294963200  ;;  %v696_v0 = vmov 0   ;;  %v546_v1 = vld [vmem:[#allocation5 + $0x4] ss:$8 sps:$4 sm:$0xff]   ;;  %v570_v17 = vld [vmem:[#allocation2] sm:$0xff]   ;;  %v93_v34 = vlaneseq }
  0x38   :  { %221 = vmatprep.mubr.bf16.mxu0 %v696_v0  ;;  %v548_v2 = vld [vmem:[#allocation5] ss:$8 sps:$4 sm:$0xff]   ;;  %189 = vmatprep.subr.bf16.mxu0 %v546_v1  ;;  %v549_v3 = vld [vmem:[#allocation5 + $0x14] ss:$8 sps:$4 sm:$0xff]   ;;  %v551_v4 = vld [vmem:[#allocation5 + $0x10] ss:$8 sps:$4 sm:$0xff]  }
  0x39   :  { %190 = vmatpush1.bf16.msra.mxu0 %v548_v2  ;;  %v552_v5 = vld [vmem:[#allocation5 + $0x24] ss:$8 sps:$4 sm:$0xff]   ;;  %v554_v6 = vld [vmem:[#allocation5 + $0x20] ss:$8 sps:$4 sm:$0xff]   ;;  %v555_v7 = vld [vmem:[#allocation5 + $0x34] ss:$8 sps:$4 sm:$0xff]  }
  0x3a   :  { %191 = vmatprep.subr.bf16.mxu0 %v549_v3  ;;  %v557_v8 = vld [vmem:[#allocation5 + $0x30] ss:$8 sps:$4 sm:$0xff]   ;;  %v558_v9 = vld [vmem:[#allocation5 + $0x44] ss:$8 sps:$4 sm:$0xff]   ;;  %v560_v10 = vld [vmem:[#allocation5 + $0x40] ss:$8 sps:$4 sm:$0xff]  }
  0x3b   :  { %v561_v11 = vld [vmem:[#allocation5 + $0x54] ss:$8 sps:$4 sm:$0xff]   ;;  %v563_v12 = vld [vmem:[#allocation5 + $0x50] ss:$8 sps:$4 sm:$0xff]   ;;  %v564_v13 = vld [vmem:[#allocation5 + $0x64] ss:$8 sps:$4 sm:$0xff]  }
  0x3c   :  { %v566_v14 = vld [vmem:[#allocation5 + $0x60] ss:$8 sps:$4 sm:$0xff]   ;;  %v567_v15 = vld [vmem:[#allocation5 + $0x74] ss:$8 sps:$4 sm:$0xff]   ;;  %v569_v16 = vld [vmem:[#allocation5 + $0x70] ss:$8 sps:$4 sm:$0xff]  }
  0x3d   :  { %192 = vmatpush1.bf16.msra.mxu0 %v551_v4  ;;  %v571_v18 = vld [vmem:[#allocation7 + $0x40] sm:$0xff]   ;;  %v573_v20 = vld [vmem:[#allocation7 + $0x48] sm:$0xff]   ;;  %v575_v22 = vld [vmem:[#allocation7 + $0x50] sm:$0xff]   ;;  %v94_v35 = vshrl.u32 %v93_v34, 7  ;;  %s697_s10 = smov [#allocation8]  }
  0x3e   :  { %193 = vmatprep.subr.bf16.mxu0 %v552_v5  ;;  %v572_v19 = vld [vmem:[#allocation7] sm:$0xff]   ;;  %514 = vmatprep.subr.bf16.mxu1 %v571_v18  ;;  %v574_v21 = vld [vmem:[#allocation7 + $0x8] sm:$0xff]   ;;  %v576_v23 = vld [vmem:[#allocation7 + $0x10] sm:$0xff]   ;;  %s466_s11 = sshll.u32 %s697_s10, 4  ;;  %s467_s11 = int_to_ptr.vmem [resolvable:$true] %s466_s11 }
  0x3f   :  { %515 = vmatpush3.bf16.msra.mxu1 %v572_v19  ;;  %v577_v24 = vld [vmem:[#allocation7 + $0x58] sm:$0xff]   ;;  %v579_v26 = vld [vmem:[#allocation7 + $0x60] sm:$0xff]   ;;  %v581_v28 = vld [vmem:[#allocation7 + $0x68] sm:$0xff]   ;;  %v95_v36 = vsub.s32 0, %v94_v35  ;;  %v99_v38 = vsub.s32 1, %v94_v35  ;;  %s661_s12 = scalar_lea.vmem %s467_s11, 256  ;;  %p666_p11 = scmp.lt.s32.totalorder %s467_s11, %s467_s11 }
  0x40   :  { %516 = vmatprep.subr.bf16.mxu1 %v573_v20  ;;  %v578_v25 = vld [vmem:[#allocation7 + $0x18] sm:$0xff]   ;;  %v580_v27 = vld [vmem:[#allocation7 + $0x20] sm:$0xff]   ;;  %v582_v29 = vld [vmem:[#allocation7 + $0x28] sm:$0xff]   ;;  %p662_p10 = scmp.ne.s32.totalorder %s467_s11, %s661_s12  ;;  %p667_p12 = scmp.lt.s32.totalorder %s661_s12, %s661_s12 }
  0x41   :  { %194 = vmatpush1.bf16.msra.mxu0 %v554_v6  ;;  %v583_v30 = vld [vmem:[#allocation7 + $0x70] sm:$0xff]   ;;  %v585_v32 = vld [vmem:[#allocation7 + $0x78] sm:$0xff]  }
  0x42   :  { %195 = vmatprep.subr.bf16.mxu0 %v555_v7  ;;  %v584_v31 = vld [vmem:[#allocation7 + $0x30] sm:$0xff]   ;;  %v586_v33 = vld [vmem:[#allocation7 + $0x38] sm:$0xff]   ;;  %p668_p13 = por %p667_p12, %p666_p11 }
  0x43   :  { %517 = vmatpush3.bf16.msra.mxu1 %v574_v21  ;;  %v91_v37 = vld [vmem:[%s790_s2] sm:$0x3] }
  0x44   :  { %518 = vmatprep.subr.bf16.mxu1 %v575_v22  ;;  %v96_v39 = vrot.slane %v91_v37, %v95_v36  ;;  %v100_v40 = vrot.slane %v91_v37, %v99_v38  ;;  %p669_p0 = pnand %p668_p13, %p662_p10 }
  0x45   :  { %196 = vmatpush1.bf16.msra.mxu0 %v557_v8 }
  0x46   :  { %197 = vmatprep.subr.bf16.mxu0 %v558_v9 }
  0x47   :  { %519 = vmatpush3.bf16.msra.mxu1 %v576_v23 }
  0x48   :  { %520 = vmatprep.subr.bf16.mxu1 %v577_v24 }
  0x49   :  { %198 = vmatpush1.bf16.msra.mxu0 %v560_v10 }
  0x4a   :  { %199 = vmatprep.subr.bf16.mxu0 %v561_v11 }
  0x4b   :  { %521 = vmatpush3.bf16.msra.mxu1 %v578_v25 }
  0x4c   :  { %522 = vmatprep.subr.bf16.mxu1 %v579_v26 }
  0x4d   :  { %200 = vmatpush1.bf16.msra.mxu0 %v563_v12 }
  0x4e   :  { %201 = vmatprep.subr.bf16.mxu0 %v564_v13 }
  0x4f   :  { %523 = vmatpush3.bf16.msra.mxu1 %v580_v27 }
  0x50   :  { %524 = vmatprep.subr.bf16.mxu1 %v581_v28  ;;  %v513_v28 = vld [vmem:[%s792_s4] ss:$0 sm:$0xff] }
  0x51   :  { %202 = vmatpush1.bf16.msra.mxu0 %v566_v14 }
  0x52   :  { %203 = vmatprep.subr.bf16.mxu0 %v567_v15 }
  0x53   :  { %525 = vmatpush3.bf16.msra.mxu1 %v582_v29 }
  0x54   :  { %526 = vmatprep.subr.bf16.mxu1 %v583_v30 }
  0x55   :  { %204 = vmatpush1.bf16.msra.mxu0 %v569_v16 }
  0x57   :  { %527 = vmatpush3.bf16.msra.mxu1 %v584_v31 }
  0x58   :  { %222 = vmatmul.mubr.bf16.vlgmr.msra.gmra.mrb[0].mxu0 %v570_v17  ;;  %528 = vmatprep.subr.bf16.mxu1 %v585_v32 }
  0x5b   :  { %529 = vmatpush3.bf16.msra.mxu1 %v586_v33 }
 0x12b   :  { %v223_v41 = vpop.f32.mrb[0].mxu0 }
 0x12c   :  { %v224_v42 = vadd.f32 %v223_v41, %v96_v39  ;;  %v225_v43 = vpop.f32.mrb[1].mxu0 }
 0x12d   :  { %v226_v44 = vadd.f32 %v225_v43, %v100_v40  ;;  %v227_v45 = vpop.f32.mrb[2].mxu0 }
 0x12e   :  { %v236_v46 = vmul.f32 %v224_v42, %v224_v42  ;;  %v228_v47 = vadd.f32 %v227_v45, %v96_v39  ;;  %v229_v48 = vpop.f32.mrb[3].mxu0  ;;  %v232_v11 = vmul.f32 0.5, %v224_v42 }
 0x12f   :  { %v237_v49 = vmul.f32 %v226_v44, %v226_v44  ;;  %v230_v50 = vadd.f32 %v229_v48, %v100_v40  ;;  %v233_v14 = vmul.f32 0.5, %v226_v44 }
 0x130   :  { %v240_v51 = vmul.f32 %v236_v46, %v224_v42  ;;  %v238_v52 = vmul.f32 %v228_v47, %v228_v47  ;;  %v234_v12 = vmul.f32 0.5, %v228_v47 }
 0x131   :  { %v241_v53 = vmul.f32 %v237_v49, %v226_v44  ;;  %v239_v54 = vmul.f32 %v230_v50, %v230_v50  ;;  %v235_v15 = vmul.f32 0.5, %v230_v50 }
 0x132   :  { %v244_v55 = vmul.f32 0.044715, %v240_v51  ;;  %v242_v56 = vmul.f32 %v238_v52, %v228_v47 }
 0x133   :  { %v245_v57 = vmul.f32 0.044715, %v241_v53  ;;  %v243_v58 = vmul.f32 %v239_v54, %v230_v50 }
 0x134   :  { %v248_v59 = vadd.f32 %v244_v55, %v224_v42  ;;  %v246_v60 = vmul.f32 0.044715, %v242_v56 }
 0x135   :  { %v247_v61 = vmul.f32 0.044715, %v243_v58  ;;  %v249_v62 = vadd.f32 %v245_v57, %v226_v44 }
 0x136   :  { %v252_v63 = vmul.f32 0.7978846, %v248_v59  ;;  %v250_v0 = vadd.f32 %v246_v60, %v228_v47 }
 0x137   :  { %v251_v1 = vadd.f32 %v247_v61, %v230_v50  ;;  %v253_v2 = vmul.f32 0.7978846, %v249_v62 }
 0x138   :  { %587 = vtanh.f32 %v252_v63  ;;  %v254_v3 = vmul.f32 0.7978846, %v250_v0 }
 0x139   :  { %v255_v4 = vmul.f32 0.7978846, %v251_v1  ;;  %589 = vtanh.f32 %v253_v2 }
 0x13a   :  { %591 = vtanh.f32 %v254_v3 }
 0x13b   :  { %593 = vtanh.f32 %v255_v4 }
 0x142   :  { %v588_v5 = vpop.eup %587 }
 0x143   :  { %v590_v6 = vpop.eup %589  ;;  %v260_v7 = vadd.f32 1.0, %v588_v5 }
 0x144   :  { %v592_v8 = vpop.eup %591  ;;  %v261_v9 = vadd.f32 1.0, %v590_v6 }
 0x145   :  { %v594_v10 = vpop.eup %593  ;;  %v262_v13 = vadd.f32 1.0, %v592_v8  ;;  %v264_v17 = vmul.f32 %v260_v7, %v232_v11 }
 0x146   :  { %v263_v16 = vadd.f32 1.0, %v594_v10  ;;  %v265_v19 = vmul.f32 %v261_v9, %v233_v14 }
 0x147   :  { %v266_v18 = vmul.f32 %v262_v13, %v234_v12 }
 0x148   :  { %v267_v20 = vmul.f32 %v263_v16, %v235_v15 }
 0x149   :  { %v270_v21 = vpack.c.bf16 %v266_v18, %v264_v17 }
 0x14a   :  { %v271_v22 = vpack.c.bf16 %v267_v20, %v265_v19 }
 0x14c   :  { %432 = vmatprep.mubr.bf16.mxu1 %v271_v22 }
 0x14d   :  { %433 = vmatmul.mubr.bf16.vlgmr.msra.gmra.mrb[0].mxu1 %v270_v21 }
 0x220   :  { %v530_v23 = vpop.f32.mrb[0].mxu1 }
 0x221   :  { %v531_v24 = vpop.f32.mrb[1].mxu1 }
 0x222   :  { %v532_v25 = vadd.f32 %v531_v24, %v530_v23  ;;  %v533_v26 = vpop.f32.mrb[2].mxu1 }
 0x223   :  { %v534_v27 = vpop.f32.mrb[3].mxu1 }
 0x224   :  { %v535_v29 = vadd.f32 %v534_v27, %v533_v26  ;;  %v457_v30 = vadd.f32 %v532_v25, %v513_v28 }
 0x226   :  { %v458_v31 = vadd.f32 %v535_v29, %v513_v28  ;;  %459 = vst [vmem:[#allocation8] sm:$0xff] %v457_v30 }
 0x228   :  { %460 = vst [vmem:[#allocation8 + $0x8] sm:$0xff] %v458_v31 }
 0x229   :  { %672 = shalt.err (!%p669_p0)
}
 0x22a   :  { %s673_s15 = scalar_lea.hbm %s793_s5, 256 }
 0x22b   :  { %p674_p1 = scmp.ne.s32.totalorder %s793_s5, %s673_s15  ;;  %p677_p2 = scmp.lt.u32.totalorder %s673_s15, %s793_s5 }
 0x22d   :  { %p679_p3 = pnand %p677_p2, %p674_p1 }
 0x22f   :  { %682 = shalt.err (!%p679_p3)
}
 0x230   :  { %472 = dma.vmem_to_hbm [thread:$0]  %s467_s11, 256, %s793_s5, [#allocation4], %s690_s28, %s690_s28, %s691_s29  }
 0x231   :  { %687 = dma.done.wait [#allocation4], 256  }
 0x232   :  { %688 = vsyncadd [#allocation4], 4294967040 }
 0x233   :  { %476 = vsyncpa [#allocation3], 1 }
 0x234   :  { %477 = vsyncpa [#allocation6], 1 }
 0x235   :  { %478 = vsyncpa [#allocation4], 1 }

</bundles_post_ra>
